<compile_context>
chip_gen: v6e
topology: v6e:2x2x1
jax: 0.10.0
libtpu: 0.0.40
codegen_flags: <defaults>
</compile_context>

<pallas_src>
import functools
import math

import jax
import jax.numpy as jnp
from jax.experimental import pallas as pl
from jax.experimental.pallas import tpu as pltpu


def _cross_attn_kernel(q_ref, kv_ref,
                       wq_ref, wkv_ref,
                       bq_ref, bkv_ref,
                       wo_ref, bo_ref,
                       gamma_ref, beta_ref,
                       out_ref,
                       *, bt, lq, lk, num_heads, head_dim, eps, matmul_dtype):
    C = num_heads * head_dim

    # ---- Layout fusion: (bt, C, L) block -> (bt*L, C) slab via per-batch
    # 2-D XLU transposes (no wrapper-side HBM transpose needed).
    q2_f32 = jnp.concatenate([q_ref[b].T for b in range(bt)], axis=0)    # (bt*lq, C) f32
    kv2_f32 = jnp.concatenate([kv_ref[b].T for b in range(bt)], axis=0)  # (bt*lk, C) f32

    q2 = q2_f32.astype(matmul_dtype)
    kv2 = kv2_f32.astype(matmul_dtype)

    # ---- Input projections.  Weights are pre-transposed (and Wq pre-scaled
    # by 1/sqrt(head_dim)); K and V are fused into one (C, 2C) matmul.
    qp = jnp.dot(q2, wq_ref[...], preferred_element_type=jnp.float32) + bq_ref[...]
    kvp = jnp.dot(kv2, wkv_ref[...], preferred_element_type=jnp.float32) + bkv_ref[...]

    # Leading-dim-only reshapes; cast to matmul_dtype so the attention
    # einsums run on the fast MXU path too (accumulation stays f32).
    qp3 = qp.reshape(bt, lq, C).astype(matmul_dtype)
    kp3 = kvp[:, :C].reshape(bt, lk, C).astype(matmul_dtype)
    vp3 = kvp[:, C:].reshape(bt, lk, C).astype(matmul_dtype)

    # ---- Per-head attention, batched over the batch dim.
    heads = []
    for h in range(num_heads):
        lo = h * head_dim
        hi = lo + head_dim
        s = jnp.einsum('bqd,bkd->bqk', qp3[:, :, lo:hi], kp3[:, :, lo:hi],
                       preferred_element_type=jnp.float32)      # (bt, lq, lk) f32
        s = s - jnp.max(s, axis=-1, keepdims=True)
        p = jnp.exp(s)
        p = p * pl.reciprocal(jnp.sum(p, axis=-1, keepdims=True), approx=True)
        oh = jnp.einsum('bqk,bkd->bqd', p.astype(matmul_dtype), vp3[:, :, lo:hi],
                        preferred_element_type=jnp.float32)     # (bt, lq, Dh) f32
        heads.append(oh)

    # Assemble heads on the lane axis, then ONE full-K=C output projection.
    o = jnp.concatenate(heads, axis=-1).reshape(bt * lq, C)     # (bt*lq, C) f32
    out_p = jnp.dot(o.astype(matmul_dtype), wo_ref[...],
                    preferred_element_type=jnp.float32) + bo_ref[...]

    # ---- Residual (f32-exact) + single-pass LayerNorm over C (torch eps).
    x = out_p + q2_f32
    mean = jnp.mean(x, axis=-1, keepdims=True)
    msq = jnp.mean(x * x, axis=-1, keepdims=True)
    var = msq - mean * mean
    y = (x - mean) * jax.lax.rsqrt(var + eps)
    y = y * gamma_ref[...] + beta_ref[...]

    # ---- Write back already in (bt, C, lq) layout (no post-kernel permute).
    for b in range(bt):
        out_ref[b] = y[b * lq:(b + 1) * lq, :].T.astype(out_ref.dtype)


def _default_batch_tile(B, C, Lq, Lk, num_heads, vmem_budget_bytes):
    """Largest batch tile that fits a VMEM budget, keeping grid >= 2 if B >= 2
    so both v7x TensorCores get work."""
    bpe = 4
    weights = bpe * (4 * C * C + 8 * C)
    per_b = bpe * (
        2 * 2 * (C * Lq)       # q input + output blocks, double-buffered
        + 2 * (C * Lk)         # kv input block, double-buffered
        + 3 * Lq * C           # q slab, qp, residual temporaries
        + 4 * Lk * C           # kv slab, kp, vp (+slack)
        + 3 * Lq * Lk          # per-head scores / probs (+slack)
        + 2 * Lq * C           # head outputs + projected output
    )
    bt = max(1, int((vmem_budget_bytes - weights) // max(per_b, 1)))
    bt = min(bt, B)
    if B >= 2:
        bt = min(bt, max(1, B // 2))   # grid >= 2 -> megacore sharding on v7x
    while B % bt:
        bt -= 1
    return max(bt, 1)


def cross_attention_plus(query_feat, key_value_feat, params, num_heads,
                         *, batch_tile=None, matmul_dtype=jnp.bfloat16,
                         vmem_limit_bytes=64 * 1024 * 1024,
                         vmem_tile_budget_bytes=40 * 1024 * 1024):
    """query_feat: (B,C,Hq,Wq), key_value_feat: (B,C,Hk,Wk) -> (B,C,Hq,Wq)."""
    B, C, Hq, Wq = query_feat.shape
    _, _, Hk, Wk = key_value_feat.shape
    Lq, Lk = Hq * Wq, Hk * Wk
    assert C % num_heads == 0
    head_dim = C // num_heads

    if batch_tile is None:
        bt = _default_batch_tile(B, C, Lq, Lk, num_heads, vmem_tile_budget_bytes)
    else:
        bt = batch_tile
    assert B % bt == 0, "batch_tile must divide B"
    nb = B // bt

    # Free reshapes only (merge spatial dims) -- NO HBM transposes around the
    # pallas_call; the kernel does the (C,L)<->(L,C) swaps on-chip.
    q_in = query_feat.reshape(B, C, Lq)
    kv_in = key_value_feat.reshape(B, C, Lk)

    # Pre-transpose weights, fold the attention scale into Wq/bq, fuse K/V
    # projection weights into one packed (C, 2C) matrix.  Weights are cast to
    # matmul_dtype (tiny); activations stay f32 in HBM and are cast in-kernel.
    scale = 1.0 / math.sqrt(head_dim)
    wq_t = (params["wq"] * scale).T.astype(matmul_dtype)                   # (C, C)
    bq_s = (params["bq"] * scale).astype(jnp.float32)                      # (1, C)
    wkv_t = jnp.concatenate([params["wk"].T, params["wv"].T],
                            axis=1).astype(matmul_dtype)                   # (C, 2C)
    bkv = jnp.concatenate([params["bk"], params["bv"]],
                          axis=1).astype(jnp.float32)                      # (1, 2C)
    wo_t = params["wo"].T.astype(matmul_dtype)                             # (C, C)

    kernel = functools.partial(_cross_attn_kernel, bt=bt, lq=Lq, lk=Lk,
                               num_heads=num_heads, head_dim=head_dim,
                               eps=1e-5, matmul_dtype=matmul_dtype)

    const2d = lambda shape: pl.BlockSpec(shape, lambda b: (0, 0))

    out = pl.pallas_call(
        kernel,
        out_shape=jax.ShapeDtypeStruct((B, C, Lq), jnp.float32),
        grid_spec=pltpu.PrefetchScalarGridSpec(
            num_scalar_prefetch=0,
            grid=(nb,),
            in_specs=[
                pl.BlockSpec((bt, C, Lq), lambda b: (b, 0, 0)),   # q  (NCL)
                pl.BlockSpec((bt, C, Lk), lambda b: (b, 0, 0)),   # kv (NCL)
                const2d((C, C)),        # Wq^T (scaled)
                const2d((C, 2 * C)),    # [Wk^T | Wv^T]
                const2d((1, C)),        # bq (scaled)
                const2d((1, 2 * C)),    # [bk | bv]
                const2d((C, C)),        # Wo^T
                const2d((1, C)),        # bo
                const2d((1, C)),        # gamma
                const2d((1, C)),        # beta
            ],
            out_specs=pl.BlockSpec((bt, C, Lq), lambda b: (b, 0, 0)),
        ),
        compiler_params=pltpu.CompilerParams(
            dimension_semantics=("parallel",),
            vmem_limit_bytes=vmem_limit_bytes,
        ),
    )(q_in, kv_in, wq_t, wkv_t, bq_s, bkv, wo_t,
      params["bo"].astype(jnp.float32),
      params["gamma"].astype(jnp.float32),
      params["beta"].astype(jnp.float32))

    # (B, C, Lq) -> (B, C, Hq, Wq): free minor-dim split.
    return out.reshape(B, C, Hq, Wq)


def _reference(query_feat, key_value_feat, params, num_heads):
    """Pure-JAX reference mirroring torch nn.MultiheadAttention + LayerNorm."""
    B, C, Hq, Wq = query_feat.shape
    _, _, Hk, Wk = key_value_feat.shape
    Lq, Lk = Hq * Wq, Hk * Wk
    Dh = C // num_heads
    q = query_feat.reshape(B, C, Lq).transpose(0, 2, 1)    # (B, Lq, C)
    kv = key_value_feat.reshape(B, C, Lk).transpose(0, 2, 1)

    qp = q @ params["wq"].T + params["bq"][0]
    kp = kv @ params["wk"].T + params["bk"][0]
    vp = kv @ params["wv"].T + params["bv"][0]

    qp = qp.reshape(B, Lq, num_heads, Dh).transpose(0, 2, 1, 3)
    kp = kp.reshape(B, Lk, num_heads, Dh).transpose(0, 2, 1, 3)
    vp = vp.reshape(B, Lk, num_heads, Dh).transpose(0, 2, 1, 3)

    s = jnp.einsum("bhqd,bhkd->bhqk", qp, kp) / math.sqrt(Dh)
    p = jax.nn.softmax(s, axis=-1)
    o = jnp.einsum("bhqk,bhkd->bhqd", p, vp)
    o = o.transpose(0, 2, 1, 3).reshape(B, Lq, C)
    o = o @ params["wo"].T + params["bo"][0]

    x = o + q
    mean = jnp.mean(x, axis=-1, keepdims=True)
    var = jnp.mean((x - mean) ** 2, axis=-1, keepdims=True)
    y = (x - mean) / jnp.sqrt(var + 1e-5)
    y = y * params["gamma"][0] + params["beta"][0]
    return y.transpose(0, 2, 1).reshape(B, C, Hq, Wq)


def _init_params(key, embed_dim):
    ks = jax.random.split(key, 6)
    scl = 1.0 / math.sqrt(embed_dim)
    C = embed_dim
    return {
        "wq": jax.random.uniform(ks[0], (C, C), jnp.float32, -scl, scl),
        "wk": jax.random.uniform(ks[1], (C, C), jnp.float32, -scl, scl),
        "wv": jax.random.uniform(ks[2], (C, C), jnp.float32, -scl, scl),
        "bq": jax.random.uniform(ks[3], (1, C), jnp.float32, -scl, scl),
        "bk": jnp.zeros((1, C), jnp.float32),
        "bv": jax.random.uniform(ks[4], (1, C), jnp.float32, -scl, scl),
        "wo": jax.random.uniform(ks[5], (C, C), jnp.float32, -scl, scl),
        "bo": jnp.zeros((1, C), jnp.float32),
        "gamma": jnp.ones((1, C), jnp.float32),
        "beta": jnp.zeros((1, C), jnp.float32),
    }


if __name__ == "__main__":
    key = jax.random.PRNGKey(0)
    B, C, num_heads = 2, 32, 4
    Hq = Wq = 4     # Lq = 16
    Hk = Wk = 4     # Lk = 16

    kq, kkv, kp = jax.random.split(key, 3)
    query_feat = jax.random.normal(kq, (B, C, Hq, Wq), jnp.float32)
    key_value_feat = jax.random.normal(kkv, (B, C, Hk, Wk), jnp.float32)
    params = _init_params(kp, C)

    ref = _reference(query_feat, key_value_feat, params, num_heads)

    # Full-precision matmul path: tight check vs the torch-equivalent reference
    # (tolerance covers the EUP approximate reciprocal in the softmax).
    out_f32 = cross_attention_plus(query_feat, key_value_feat, params, num_heads,
                                   matmul_dtype=jnp.float32)
    out_f32 = jax.block_until_ready(out_f32)
    assert out_f32.shape == (B, C, Hq, Wq)
    assert jnp.allclose(out_f32, ref, atol=3e-3, rtol=3e-3), "f32 mismatch vs reference"

    # Default mixed-precision path (bf16 MXU operands, f32 accumulation and
    # f32 residual/LayerNorm epilogue).
    out_bf16 = cross_attention_plus(query_feat, key_value_feat, params, num_heads)
    out_bf16 = jax.block_until_ready(out_bf16)
    assert out_bf16.shape == (B, C, Hq, Wq)
    assert jnp.allclose(out_bf16, ref, atol=5e-2, rtol=5e-2), "bf16 mismatch vs reference"

    print("KERNEL_OK")
</pallas_src>

<mosaic_0001>
module attributes {stable_mosaic.version = 11 : i64} {
  func.func @_cross_attn_kernel(%arg0: i32, %arg1: memref<1x32x16xf32, #tpu.memory_space<vmem>>, %arg2: memref<1x32x16xf32, #tpu.memory_space<vmem>>, %arg3: memref<32x32xf32, #tpu.memory_space<vmem>>, %arg4: memref<32x64xf32, #tpu.memory_space<vmem>>, %arg5: memref<1x32xf32, #tpu.memory_space<vmem>>, %arg6: memref<1x64xf32, #tpu.memory_space<vmem>>, %arg7: memref<32x32xf32, #tpu.memory_space<vmem>>, %arg8: memref<1x32xf32, #tpu.memory_space<vmem>>, %arg9: memref<1x32xf32, #tpu.memory_space<vmem>>, %arg10: memref<1x32xf32, #tpu.memory_space<vmem>>, %arg11: memref<1x32x16xf32, #tpu.memory_space<vmem>>) attributes {dimension_semantics = [#tpu.dimension_semantics<parallel>], iteration_bounds = array<i64: 2>, scalar_prefetch = 0 : i64, scratch_operands = 0 : i64, tpu.core_type = #tpu.core_type<tc>, window_params = [{transform_indices = @transform_0, window_bounds = array<i64: 1, 32, 16>}, {transform_indices = @transform_1, window_bounds = array<i64: 1, 32, 16>}, {pipeline_mode = #tpu.pipeline_mode<synchronous>, transform_indices = @transform_2, window_bounds = array<i64: 32, 32>}, {pipeline_mode = #tpu.pipeline_mode<synchronous>, transform_indices = @transform_3, window_bounds = array<i64: 32, 64>}, {pipeline_mode = #tpu.pipeline_mode<synchronous>, transform_indices = @transform_4, window_bounds = array<i64: 1, 32>}, {pipeline_mode = #tpu.pipeline_mode<synchronous>, transform_indices = @transform_5, window_bounds = array<i64: 1, 64>}, {pipeline_mode = #tpu.pipeline_mode<synchronous>, transform_indices = @transform_6, window_bounds = array<i64: 32, 32>}, {pipeline_mode = #tpu.pipeline_mode<synchronous>, transform_indices = @transform_7, window_bounds = array<i64: 1, 32>}, {pipeline_mode = #tpu.pipeline_mode<synchronous>, transform_indices = @transform_8, window_bounds = array<i64: 1, 32>}, {pipeline_mode = #tpu.pipeline_mode<synchronous>, transform_indices = @transform_9, window_bounds = array<i64: 1, 32>}, {transform_indices = @transform_10, window_bounds = array<i64: 1, 32, 16>}]} {
    %c0 = arith.constant 0 : index
    %c0_0 = arith.constant 0 : index
    %c0_1 = arith.constant 0 : index
    %0 = vector.load %arg1[%c0, %c0_0, %c0_1] : memref<1x32x16xf32, #tpu.memory_space<vmem>>, vector<1x32x16xf32>
    %1 = vector.shape_cast %0 : vector<1x32x16xf32> to vector<32x16xf32>
    %2 = tpu.transpose %1, [1, 0] : vector<32x16xf32> -> vector<16x32xf32>
    %c0_2 = arith.constant 0 : index
    %c0_3 = arith.constant 0 : index
    %c0_4 = arith.constant 0 : index
    %3 = vector.load %arg2[%c0_2, %c0_3, %c0_4] : memref<1x32x16xf32, #tpu.memory_space<vmem>>, vector<1x32x16xf32>
    %4 = vector.shape_cast %3 : vector<1x32x16xf32> to vector<32x16xf32>
    %5 = tpu.transpose %4, [1, 0] : vector<32x16xf32> -> vector<16x32xf32>
    %c0_5 = arith.constant 0 : index
    %c0_6 = arith.constant 0 : index
    %6 = vector.load %arg3[%c0_5, %c0_6] : memref<32x32xf32, #tpu.memory_space<vmem>>, vector<32x32xf32>
    %cst = arith.constant dense<0.000000e+00> : vector<16x32xf32>
    %7 = tpu.matmul %2, %6, %cst {dimension_numbers = #tpu.dot_dimension_numbers<[1], [0], [0], [1], [0, 0, 1, 1], [], []>} : vector<16x32xf32>, vector<32x32xf32>, vector<16x32xf32> -> vector<16x32xf32>
    %c0_7 = arith.constant 0 : index
    %c0_8 = arith.constant 0 : index
    %8 = vector.load %arg5[%c0_7, %c0_8] : memref<1x32xf32, #tpu.memory_space<vmem>>, vector<1x32xf32>
    %9 = vector.broadcast %8 : vector<1x32xf32> to vector<16x32xf32>
    %10 = arith.addf %7, %9 : vector<16x32xf32>
    %c0_9 = arith.constant 0 : index
    %c0_10 = arith.constant 0 : index
    %11 = vector.load %arg4[%c0_9, %c0_10] : memref<32x64xf32, #tpu.memory_space<vmem>>, vector<32x64xf32>
    %cst_11 = arith.constant dense<0.000000e+00> : vector<16x64xf32>
    %12 = tpu.matmul %5, %11, %cst_11 {dimension_numbers = #tpu.dot_dimension_numbers<[1], [0], [0], [1], [0, 0, 1, 1], [], []>} : vector<16x32xf32>, vector<32x64xf32>, vector<16x64xf32> -> vector<16x64xf32>
    %c0_12 = arith.constant 0 : index
    %c0_13 = arith.constant 0 : index
    %13 = vector.load %arg6[%c0_12, %c0_13] : memref<1x64xf32, #tpu.memory_space<vmem>>, vector<1x64xf32>
    %14 = vector.broadcast %13 : vector<1x64xf32> to vector<16x64xf32>
    %15 = arith.addf %12, %14 : vector<16x64xf32>
    %16 = vector.shape_cast %10 : vector<16x32xf32> to vector<1x16x32xf32>
    %17 = vector.extract_strided_slice %15 {offsets = [0, 0], sizes = [16, 32], strides = [1, 1]} : vector<16x64xf32> to vector<16x32xf32>
    %18 = vector.shape_cast %17 : vector<16x32xf32> to vector<1x16x32xf32>
    %19 = vector.extract_strided_slice %15 {offsets = [0, 32], sizes = [16, 32], strides = [1, 1]} : vector<16x64xf32> to vector<16x32xf32>
    %20 = vector.shape_cast %19 : vector<16x32xf32> to vector<1x16x32xf32>
    %21 = vector.extract_strided_slice %16 {offsets = [0, 0, 0], sizes = [1, 16, 8], strides = [1, 1, 1]} : vector<1x16x32xf32> to vector<1x16x8xf32>
    %22 = vector.extract_strided_slice %18 {offsets = [0, 0, 0], sizes = [1, 16, 8], strides = [1, 1, 1]} : vector<1x16x32xf32> to vector<1x16x8xf32>
    "tpu.trace_start"() <{level = 10 : i32, message = "bqd,bkd->bqk"}> : () -> ()
    %cst_14 = arith.constant dense<0.000000e+00> : vector<1x16x16xf32>
    %23 = tpu.matmul %21, %22, %cst_14 {dimension_numbers = #tpu.dot_dimension_numbers<[2], [2], [1], [1], [0, 0, 0, 1, 1, 1], [0], [0]>} : vector<1x16x8xf32>, vector<1x16x8xf32>, vector<1x16x16xf32> -> vector<1x16x16xf32>
    "tpu.trace_stop"() : () -> ()
    %cst_15 = arith.constant dense<0xFF800000> : vector<1x16xf32>
    %24 = vector.multi_reduction <maximumf>, %23, %cst_15 [2] : vector<1x16x16xf32> to vector<1x16xf32>
    %25 = vector.shape_cast %24 : vector<1x16xf32> to vector<1x16x1xf32>
    %26 = vector.broadcast %25 : vector<1x16x1xf32> to vector<1x16x16xf32>
    %27 = arith.subf %23, %26 : vector<1x16x16xf32>
    %28 = math.exp %27 : vector<1x16x16xf32>
    %cst_16 = arith.constant dense<0.000000e+00> : vector<1x16xf32>
    %29 = vector.multi_reduction <add>, %28, %cst_16 [2] : vector<1x16x16xf32> to vector<1x16xf32>
    %30 = vector.shape_cast %29 : vector<1x16xf32> to vector<1x16x1xf32>
    %31 = tpu.reciprocal %30 {approx = true} : vector<1x16x1xf32> -> vector<1x16x1xf32>
    %32 = vector.broadcast %31 : vector<1x16x1xf32> to vector<1x16x16xf32>
    %33 = arith.mulf %28, %32 : vector<1x16x16xf32>
    %34 = vector.extract_strided_slice %20 {offsets = [0, 0, 0], sizes = [1, 16, 8], strides = [1, 1, 1]} : vector<1x16x32xf32> to vector<1x16x8xf32>
    "tpu.trace_start"() <{level = 10 : i32, message = "bqk,bkd->bqd"}> : () -> ()
    %cst_17 = arith.constant dense<0.000000e+00> : vector<1x16x8xf32>
    %35 = tpu.matmul %33, %34, %cst_17 {dimension_numbers = #tpu.dot_dimension_numbers<[2], [1], [1], [2], [0, 0, 0, 1, 1, 2], [0], [0]>} : vector<1x16x16xf32>, vector<1x16x8xf32>, vector<1x16x8xf32> -> vector<1x16x8xf32>
    "tpu.trace_stop"() : () -> ()
    %36 = vector.extract_strided_slice %16 {offsets = [0, 0, 8], sizes = [1, 16, 8], strides = [1, 1, 1]} : vector<1x16x32xf32> to vector<1x16x8xf32>
    %37 = vector.extract_strided_slice %18 {offsets = [0, 0, 8], sizes = [1, 16, 8], strides = [1, 1, 1]} : vector<1x16x32xf32> to vector<1x16x8xf32>
    "tpu.trace_start"() <{level = 10 : i32, message = "bqd,bkd->bqk"}> : () -> ()
    %cst_18 = arith.constant dense<0.000000e+00> : vector<1x16x16xf32>
    %38 = tpu.matmul %36, %37, %cst_18 {dimension_numbers = #tpu.dot_dimension_numbers<[2], [2], [1], [1], [0, 0, 0, 1, 1, 1], [0], [0]>} : vector<1x16x8xf32>, vector<1x16x8xf32>, vector<1x16x16xf32> -> vector<1x16x16xf32>
    "tpu.trace_stop"() : () -> ()
    %cst_19 = arith.constant dense<0xFF800000> : vector<1x16xf32>
    %39 = vector.multi_reduction <maximumf>, %38, %cst_19 [2] : vector<1x16x16xf32> to vector<1x16xf32>
    %40 = vector.shape_cast %39 : vector<1x16xf32> to vector<1x16x1xf32>
    %41 = vector.broadcast %40 : vector<1x16x1xf32> to vector<1x16x16xf32>
    %42 = arith.subf %38, %41 : vector<1x16x16xf32>
    %43 = math.exp %42 : vector<1x16x16xf32>
    %cst_20 = arith.constant dense<0.000000e+00> : vector<1x16xf32>
    %44 = vector.multi_reduction <add>, %43, %cst_20 [2] : vector<1x16x16xf32> to vector<1x16xf32>
    %45 = vector.shape_cast %44 : vector<1x16xf32> to vector<1x16x1xf32>
    %46 = tpu.reciprocal %45 {approx = true} : vector<1x16x1xf32> -> vector<1x16x1xf32>
    %47 = vector.broadcast %46 : vector<1x16x1xf32> to vector<1x16x16xf32>
    %48 = arith.mulf %43, %47 : vector<1x16x16xf32>
    %49 = vector.extract_strided_slice %20 {offsets = [0, 0, 8], sizes = [1, 16, 8], strides = [1, 1, 1]} : vector<1x16x32xf32> to vector<1x16x8xf32>
    "tpu.trace_start"() <{level = 10 : i32, message = "bqk,bkd->bqd"}> : () -> ()
    %cst_21 = arith.constant dense<0.000000e+00> : vector<1x16x8xf32>
    %50 = tpu.matmul %48, %49, %cst_21 {dimension_numbers = #tpu.dot_dimension_numbers<[2], [1], [1], [2], [0, 0, 0, 1, 1, 2], [0], [0]>} : vector<1x16x16xf32>, vector<1x16x8xf32>, vector<1x16x8xf32> -> vector<1x16x8xf32>
    "tpu.trace_stop"() : () -> ()
    %51 = vector.extract_strided_slice %16 {offsets = [0, 0, 16], sizes = [1, 16, 8], strides = [1, 1, 1]} : vector<1x16x32xf32> to vector<1x16x8xf32>
    %52 = vector.extract_strided_slice %18 {offsets = [0, 0, 16], sizes = [1, 16, 8], strides = [1, 1, 1]} : vector<1x16x32xf32> to vector<1x16x8xf32>
    "tpu.trace_start"() <{level = 10 : i32, message = "bqd,bkd->bqk"}> : () -> ()
    %cst_22 = arith.constant dense<0.000000e+00> : vector<1x16x16xf32>
    %53 = tpu.matmul %51, %52, %cst_22 {dimension_numbers = #tpu.dot_dimension_numbers<[2], [2], [1], [1], [0, 0, 0, 1, 1, 1], [0], [0]>} : vector<1x16x8xf32>, vector<1x16x8xf32>, vector<1x16x16xf32> -> vector<1x16x16xf32>
    "tpu.trace_stop"() : () -> ()
    %cst_23 = arith.constant dense<0xFF800000> : vector<1x16xf32>
    %54 = vector.multi_reduction <maximumf>, %53, %cst_23 [2] : vector<1x16x16xf32> to vector<1x16xf32>
    %55 = vector.shape_cast %54 : vector<1x16xf32> to vector<1x16x1xf32>
    %56 = vector.broadcast %55 : vector<1x16x1xf32> to vector<1x16x16xf32>
    %57 = arith.subf %53, %56 : vector<1x16x16xf32>
    %58 = math.exp %57 : vector<1x16x16xf32>
    %cst_24 = arith.constant dense<0.000000e+00> : vector<1x16xf32>
    %59 = vector.multi_reduction <add>, %58, %cst_24 [2] : vector<1x16x16xf32> to vector<1x16xf32>
    %60 = vector.shape_cast %59 : vector<1x16xf32> to vector<1x16x1xf32>
    %61 = tpu.reciprocal %60 {approx = true} : vector<1x16x1xf32> -> vector<1x16x1xf32>
    %62 = vector.broadcast %61 : vector<1x16x1xf32> to vector<1x16x16xf32>
    %63 = arith.mulf %58, %62 : vector<1x16x16xf32>
    %64 = vector.extract_strided_slice %20 {offsets = [0, 0, 16], sizes = [1, 16, 8], strides = [1, 1, 1]} : vector<1x16x32xf32> to vector<1x16x8xf32>
    "tpu.trace_start"() <{level = 10 : i32, message = "bqk,bkd->bqd"}> : () -> ()
    %cst_25 = arith.constant dense<0.000000e+00> : vector<1x16x8xf32>
    %65 = tpu.matmul %63, %64, %cst_25 {dimension_numbers = #tpu.dot_dimension_numbers<[2], [1], [1], [2], [0, 0, 0, 1, 1, 2], [0], [0]>} : vector<1x16x16xf32>, vector<1x16x8xf32>, vector<1x16x8xf32> -> vector<1x16x8xf32>
    "tpu.trace_stop"() : () -> ()
    %66 = vector.extract_strided_slice %16 {offsets = [0, 0, 24], sizes = [1, 16, 8], strides = [1, 1, 1]} : vector<1x16x32xf32> to vector<1x16x8xf32>
    %67 = vector.extract_strided_slice %18 {offsets = [0, 0, 24], sizes = [1, 16, 8], strides = [1, 1, 1]} : vector<1x16x32xf32> to vector<1x16x8xf32>
    "tpu.trace_start"() <{level = 10 : i32, message = "bqd,bkd->bqk"}> : () -> ()
    %cst_26 = arith.constant dense<0.000000e+00> : vector<1x16x16xf32>
    %68 = tpu.matmul %66, %67, %cst_26 {dimension_numbers = #tpu.dot_dimension_numbers<[2], [2], [1], [1], [0, 0, 0, 1, 1, 1], [0], [0]>} : vector<1x16x8xf32>, vector<1x16x8xf32>, vector<1x16x16xf32> -> vector<1x16x16xf32>
    "tpu.trace_stop"() : () -> ()
    %cst_27 = arith.constant dense<0xFF800000> : vector<1x16xf32>
    %69 = vector.multi_reduction <maximumf>, %68, %cst_27 [2] : vector<1x16x16xf32> to vector<1x16xf32>
    %70 = vector.shape_cast %69 : vector<1x16xf32> to vector<1x16x1xf32>
    %71 = vector.broadcast %70 : vector<1x16x1xf32> to vector<1x16x16xf32>
    %72 = arith.subf %68, %71 : vector<1x16x16xf32>
    %73 = math.exp %72 : vector<1x16x16xf32>
    %cst_28 = arith.constant dense<0.000000e+00> : vector<1x16xf32>
    %74 = vector.multi_reduction <add>, %73, %cst_28 [2] : vector<1x16x16xf32> to vector<1x16xf32>
    %75 = vector.shape_cast %74 : vector<1x16xf32> to vector<1x16x1xf32>
    %76 = tpu.reciprocal %75 {approx = true} : vector<1x16x1xf32> -> vector<1x16x1xf32>
    %77 = vector.broadcast %76 : vector<1x16x1xf32> to vector<1x16x16xf32>
    %78 = arith.mulf %73, %77 : vector<1x16x16xf32>
    %79 = vector.extract_strided_slice %20 {offsets = [0, 0, 24], sizes = [1, 16, 8], strides = [1, 1, 1]} : vector<1x16x32xf32> to vector<1x16x8xf32>
    "tpu.trace_start"() <{level = 10 : i32, message = "bqk,bkd->bqd"}> : () -> ()
    %cst_29 = arith.constant dense<0.000000e+00> : vector<1x16x8xf32>
    %80 = tpu.matmul %78, %79, %cst_29 {dimension_numbers = #tpu.dot_dimension_numbers<[2], [1], [1], [2], [0, 0, 0, 1, 1, 2], [0], [0]>} : vector<1x16x16xf32>, vector<1x16x8xf32>, vector<1x16x8xf32> -> vector<1x16x8xf32>
    "tpu.trace_stop"() : () -> ()
    %81 = tpu.concatenate %35, %50, %65, %80 in 2 : vector<1x16x8xf32>, vector<1x16x8xf32>, vector<1x16x8xf32>, vector<1x16x8xf32> -> vector<1x16x32xf32>
    %82 = vector.shape_cast %81 : vector<1x16x32xf32> to vector<16x32xf32>
    %c0_30 = arith.constant 0 : index
    %c0_31 = arith.constant 0 : index
    %83 = vector.load %arg7[%c0_30, %c0_31] : memref<32x32xf32, #tpu.memory_space<vmem>>, vector<32x32xf32>
    %cst_32 = arith.constant dense<0.000000e+00> : vector<16x32xf32>
    %84 = tpu.matmul %82, %83, %cst_32 {dimension_numbers = #tpu.dot_dimension_numbers<[1], [0], [0], [1], [0, 0, 1, 1], [], []>} : vector<16x32xf32>, vector<32x32xf32>, vector<16x32xf32> -> vector<16x32xf32>
    %c0_33 = arith.constant 0 : index
    %c0_34 = arith.constant 0 : index
    %85 = vector.load %arg8[%c0_33, %c0_34] : memref<1x32xf32, #tpu.memory_space<vmem>>, vector<1x32xf32>
    %86 = vector.broadcast %85 : vector<1x32xf32> to vector<16x32xf32>
    %87 = arith.addf %84, %86 : vector<16x32xf32>
    %88 = arith.addf %87, %2 : vector<16x32xf32>
    %cst_35 = arith.constant dense<0.000000e+00> : vector<16xf32>
    %89 = vector.multi_reduction <add>, %88, %cst_35 [1] : vector<16x32xf32> to vector<16xf32>
    %90 = vector.shape_cast %89 : vector<16xf32> to vector<16x1xf32>
    %cst_36 = arith.constant 3.200000e+01 : f32
    %91 = vector.broadcast %cst_36 : f32 to vector<16x1xf32>
    %92 = arith.divf %90, %91 : vector<16x1xf32>
    %93 = arith.mulf %88, %88 : vector<16x32xf32>
    %cst_37 = arith.constant dense<0.000000e+00> : vector<16xf32>
    %94 = vector.multi_reduction <add>, %93, %cst_37 [1] : vector<16x32xf32> to vector<16xf32>
    %95 = vector.shape_cast %94 : vector<16xf32> to vector<16x1xf32>
    %cst_38 = arith.constant 3.200000e+01 : f32
    %96 = vector.broadcast %cst_38 : f32 to vector<16x1xf32>
    %97 = arith.divf %95, %96 : vector<16x1xf32>
    %98 = arith.mulf %92, %92 : vector<16x1xf32>
    %99 = arith.subf %97, %98 : vector<16x1xf32>
    %100 = vector.broadcast %92 : vector<16x1xf32> to vector<16x32xf32>
    %101 = arith.subf %88, %100 : vector<16x32xf32>
    %cst_39 = arith.constant 9.99999974E-6 : f32
    %102 = vector.broadcast %cst_39 : f32 to vector<16x1xf32>
    %103 = arith.addf %99, %102 : vector<16x1xf32>
    %104 = math.rsqrt %103 : vector<16x1xf32>
    %105 = vector.broadcast %104 : vector<16x1xf32> to vector<16x32xf32>
    %106 = arith.mulf %101, %105 : vector<16x32xf32>
    %c0_40 = arith.constant 0 : index
    %c0_41 = arith.constant 0 : index
    %107 = vector.load %arg9[%c0_40, %c0_41] : memref<1x32xf32, #tpu.memory_space<vmem>>, vector<1x32xf32>
    %108 = vector.broadcast %107 : vector<1x32xf32> to vector<16x32xf32>
    %109 = arith.mulf %106, %108 : vector<16x32xf32>
    %c0_42 = arith.constant 0 : index
    %c0_43 = arith.constant 0 : index
    %110 = vector.load %arg10[%c0_42, %c0_43] : memref<1x32xf32, #tpu.memory_space<vmem>>, vector<1x32xf32>
    %111 = vector.broadcast %110 : vector<1x32xf32> to vector<16x32xf32>
    %112 = arith.addf %109, %111 : vector<16x32xf32>
    %113 = tpu.transpose %112, [1, 0] : vector<16x32xf32> -> vector<32x16xf32>
    %c0_44 = arith.constant 0 : index
    %c0_45 = arith.constant 0 : index
    %c0_46 = arith.constant 0 : index
    %114 = vector.load %arg11[%c0_44, %c0_45, %c0_46] : memref<1x32x16xf32, #tpu.memory_space<vmem>>, vector<1x32x16xf32>
    %115 = vector.shape_cast %114 : vector<1x32x16xf32> to vector<32x16xf32>
    %116 = vector.shape_cast %113 : vector<32x16xf32> to vector<1x32x16xf32>
    tpu.vector_store %arg11[%c0_44, %c0_45, %c0_46], %116 {strides = array<i32>} : memref<1x32x16xf32, #tpu.memory_space<vmem>>, vector<1x32x16xf32>,
    return
  }
  func.func @transform_0(%arg0: i32) -> (i32, i32, i32) {
    %c0_i32 = arith.constant 0 : i32
    %c0_i32_0 = arith.constant 0 : i32
    %c0_i32_1 = arith.constant 0 : i32
    return %arg0, %c0_i32, %c0_i32_0 : i32, i32, i32
  }
  func.func @transform_1(%arg0: i32) -> (i32, i32, i32) {
    %c0_i32 = arith.constant 0 : i32
    %c0_i32_0 = arith.constant 0 : i32
    %c0_i32_1 = arith.constant 0 : i32
    return %arg0, %c0_i32, %c0_i32_0 : i32, i32, i32
  }
  func.func @transform_2(%arg0: i32) -> (i32, i32) {
    %c0_i32 = arith.constant 0 : i32
    %c0_i32_0 = arith.constant 0 : i32
    %c0_i32_1 = arith.constant 0 : i32
    return %c0_i32, %c0_i32_0 : i32, i32
  }
  func.func @transform_3(%arg0: i32) -> (i32, i32) {
    %c0_i32 = arith.constant 0 : i32
    %c0_i32_0 = arith.constant 0 : i32
    %c0_i32_1 = arith.constant 0 : i32
    return %c0_i32, %c0_i32_0 : i32, i32
  }
  func.func @transform_4(%arg0: i32) -> (i32, i32) {
    %c0_i32 = arith.constant 0 : i32
    %c0_i32_0 = arith.constant 0 : i32
    %c0_i32_1 = arith.constant 0 : i32
    return %c0_i32, %c0_i32_0 : i32, i32
  }
  func.func @transform_5(%arg0: i32) -> (i32, i32) {
    %c0_i32 = arith.constant 0 : i32
    %c0_i32_0 = arith.constant 0 : i32
    %c0_i32_1 = arith.constant 0 : i32
    return %c0_i32, %c0_i32_0 : i32, i32
  }
  func.func @transform_6(%arg0: i32) -> (i32, i32) {
    %c0_i32 = arith.constant 0 : i32
    %c0_i32_0 = arith.constant 0 : i32
    %c0_i32_1 = arith.constant 0 : i32
    return %c0_i32, %c0_i32_0 : i32, i32
  }
  func.func @transform_7(%arg0: i32) -> (i32, i32) {
    %c0_i32 = arith.constant 0 : i32
    %c0_i32_0 = arith.constant 0 : i32
    %c0_i32_1 = arith.constant 0 : i32
    return %c0_i32, %c0_i32_0 : i32, i32
  }
  func.func @transform_8(%arg0: i32) -> (i32, i32) {
    %c0_i32 = arith.constant 0 : i32
    %c0_i32_0 = arith.constant 0 : i32
    %c0_i32_1 = arith.constant 0 : i32
    return %c0_i32, %c0_i32_0 : i32, i32
  }
  func.func @transform_9(%arg0: i32) -> (i32, i32) {
    %c0_i32 = arith.constant 0 : i32
    %c0_i32_0 = arith.constant 0 : i32
    %c0_i32_1 = arith.constant 0 : i32
    return %c0_i32, %c0_i32_0 : i32, i32
  }
  func.func @transform_10(%arg0: i32) -> (i32, i32, i32) {
    %c0_i32 = arith.constant 0 : i32
    %c0_i32_0 = arith.constant 0 : i32
    %c0_i32_1 = arith.constant 0 : i32
    return %arg0, %c0_i32, %c0_i32_0 : i32, i32, i32
  }
}

</mosaic_0001>

<bundles_post_ra>
// kernel: tpu_custom_call.1
= control target key start
LH: loop header
LB: loop body
LE: loop exit
PB: predicated region body
PF: predicated region fallthrough
CT: control target
= control target key end

     0   :  { %s2030_s13 = smov 0   ;;  %s2228_s0 = inlined_call_operand.vmem [shape: f32[2,32,16], index: 0, kind: input, shape index: {}]   ;;  %s2229_s1 = inlined_call_operand.vmem [shape: f32[2,32,16], index: 1, kind: input, shape index: {}]   ;;  %s2230_s2 = inlined_call_operand.vmem [shape: f32[32,32], index: 2, kind: input, shape index: {}]   ;;  %s2231_s3 = inlined_call_operand.vmem [shape: f32[32,64], index: 3, kind: input, shape index: {}]   ;;  %s2232_s4 = inlined_call_operand.vmem [shape: f32[1,32], index: 4, kind: input, shape index: {}]   ;;  %s2233_s5 = inlined_call_operand.vmem [shape: f32[1,64], index: 5, kind: input, shape index: {}]   ;;  %s2234_s6 = inlined_call_operand.vmem [shape: f32[32,32], index: 6, kind: input, shape index: {}]   ;;  %s2235_s7 = inlined_call_operand.vmem [shape: f32[1,32], index: 7, kind: input, shape index: {}]   ;;  %s2236_s8 = inlined_call_operand.vmem [shape: f32[1,32], index: 8, kind: input, shape index: {}]   ;;  %s2237_s9 = inlined_call_operand.vmem [shape: f32[1,32], index: 9, kind: input, shape index: {}]   ;;  %s2238_s10 = inlined_call_operand.vmem [shape: f32[2,32,16], index: 10, kind: output, shape index: {}]  }
   0x1 LB: > { %s1712_s14 = sadd.s32 4294967295, %s1963_s13   ;;  %p1716_p0 = scmp.ge.s32.totalorder %s1963_s13, 1  ;;  %s1963_s13 = sphi %s2030_s13, %s20_s13  }
   0x2   : > { %p322_p1 = scmp.lt.s32.totalorder %s1963_s13, 3 }
   0x4   : > { %p323_p2 = pnand %p1716_p0, %p322_p1 }
   0x5   : > { %p365_p3 = scmp.lt.s32.totalorder (!%p323_p2), %s1712_s14, 1  ;;  %s1965_s24 = smov (!%p323_p2), 96  }
   0x6   : > { %326 = sbr.rel (%p323_p2) target bundleno = 2771 (0xad3), region = 60  ;;  %s1966_s25 = smov (!%p323_p2), 120  }
   0x7   : > { %s1967_s26 = smov (!%p323_p2), 112   ;;  %s1968_s27 = smov (!%p323_p2), 88  }
   0x8   : > { %s1970_s29 = smov (!%p323_p2), 104   ;;  %s1971_s30 = smov (!%p323_p2), 72  }
   0x9   : > { %s1973_s12 = smov (!%p323_p2), 16   ;;  %s1974_s22 = smov (!%p323_p2), 24  }
   0xb   : > { %v548_v0 = vld [vmem:[%s2231_s3 + $0x18] sm:$0xff]  ;;  %v547_v1 = vld [vmem:[%s2231_s3 + $0x10] sm:$0xff]  ;;  %s2240_s14 = smov (!%p365_p3, %s1712_s14), 1  ;;  %v546_v3 = vld [vmem:[%s2231_s3 + $0x8] sm:$0xff]  ;;  %vm463_vm0 = vcmask 261120   ;;  %vm637_vm1 = vcmask 64512  }
   0xc   : > { %v455_v2 = vld [vmem:[%s2230_s2 + $0x18] sm:$0xff]  ;;  %1824 = vmatprep.subr.mxu1 %v548_v0  ;;  %s2050_s23 = sshll.u32 %s2240_s14, 5  ;;  %v454_v4 = vld [vmem:[%s2230_s2 + $0x10] sm:$0xff]  ;;  %v545_v5 = vld [vmem:[%s2231_s3] sm:$0xff]  ;;  %vm725_vm2 = vcmask 130048   ;;  %vm1463_vm3 = vcmask 195584  }
   0xd   : > { %1813 = vmatprep.subr.mxu0 %v455_v2  ;;  %1825 = vmatpush3.msra.mxu1 %v548_v0  ;;  %s374_s28 = scalar_lea.vmem %s2229_s1, %s2050_s23  ;;  %s369_s11 = scalar_lea.vmem %s2228_s0, %s2050_s23  ;;  %v453_v6 = vld [vmem:[%s2230_s2 + $0x8] sm:$0xff]  ;;  %v452_v11 = vld [vmem:[%s2230_s2] sm:$0xff] }
   0xe   : > { %1814 = vmatpush3.msra.mxu0 %v455_v2  ;;  %1826 = vmatprep.subr.mxu1 %v547_v1  ;;  %v416_v7 = vld [vmem:[%s374_s28] sm:$0xff]  ;;  %v417_v9 = vld [vmem:[%s374_s28 + $0x8] sm:$0xff]  ;;  %v418_v12 = vld [vmem:[%s374_s28 + $0x10] sm:$0xff] }
   0xf   : > { %1827 = vmatpush3.msra.mxu1 %v547_v1  ;;  %1815 = vmatprep.subr.mxu0 %v454_v4  ;;  %v380_v8 = vld [vmem:[%s369_s11] sm:$0xff]  ;;  %v381_v10 = vld [vmem:[%s369_s11 + $0x8] sm:$0xff]  ;;  %v382_v13 = vld [vmem:[%s369_s11 + $0x10] sm:$0xff] }
  0x10   : > { %1828 = vmatprep.subr.mxu1 %v546_v3  ;;  %1816 = vmatpush3.msra.mxu0 %v454_v4  ;;  %v419_v14 = vld [vmem:[%s374_s28 + $0x18] sm:$0xff]  ;;  %v1726_v20 = vld [vmem:[%s2233_s5] ss:$0 sm:$0xff]  ;;  %s1969_s28 = smov 80  }
  0x11   : > { %1829 = vmatpush3.msra.mxu1 %v546_v3  ;;  %420 = vxpose.xlu0.b32.start [1/4] (short) (narrow) %v416_v7, 16  ;;  %v383_v15 = vld [vmem:[%s369_s11 + $0x18] sm:$0xff]  ;;  %v1723_v23 = vld [vmem:[%s2232_s4] ss:$0 sm:$0xff]  ;;  %s1972_s11 = smov 8  }
  0x12   : > { %384 = vxpose.xlu1.b32.start [1/4] (short) (narrow) %v380_v8, 16  ;;  %1830 = vmatprep.subr.mxu1 %v545_v5 }
  0x13   : > { %1817 = vmatprep.subr.mxu0 %v453_v6  ;;  %1831 = vmatpush3.msra.mxu1 %v545_v5 }
  0x14   : > { %1818 = vmatpush3.msra.mxu0 %v453_v6 }
  0x15   : > { %1819 = vmatprep.subr.mxu0 %v452_v11  ;;  %421 = vxpose.xlu0.b32.cont [2/4] (short) (narrow) %v417_v9, 16 }
  0x16   : > { %385 = vxpose.xlu1.b32.cont [2/4] (short) (narrow) %v381_v10, 16  ;;  %1820 = vmatpush3.msra.mxu0 %v452_v11 }
  0x19   : > { %422 = vxpose.xlu0.b32.cont [3/4] (short) (narrow) %v418_v12, 16 }
  0x1a   : > { %386 = vxpose.xlu1.b32.cont [3/4] (short) (narrow) %v382_v13, 16 }
  0x1d   : > { %423 = vxpose.xlu0.b32.end [4/4] (short) (narrow) %v419_v14, 16 }
  0x1e   : > { %387 = vxpose.xlu1.b32.end [4/4] (short) (narrow) %v383_v15, 16 }
  0x8d   : > { %v436_v16 = vpop.trf.xlu0 }
  0x8e   : > { %v2072_v17 = vpop.trf.xlu1  ;;  %1832 = vmatprep.mubr.msk.f32.mxu1 %vm463_vm0, %v436_v16 }
  0x8f   : > { %1821 = vmatprep.mubr.msk.f32.mxu0 %vm463_vm0, %v2072_v17 }
  0x91   : > { %v437_v18 = vpop.trf.xlu0 }
  0x92   : > { %v2077_v19 = vpop.trf.xlu1  ;;  %1833 = vmatmul.mubr.msk.f32.vlgmr.msra.gmra.mxu1 %vm463_vm0, %v437_v18 }
  0x93   : > { %1822 = vmatmul.mubr.msk.f32.vlgmr.msra.gmra.mxu0 %vm463_vm0, %v2077_v19 }
 0x152   : > { %v1834_v21 = vpop.f32.mrf.mxu1 }
 0x153   : > { %v1823_v22 = vpop.f32.mrf.mxu0  ;;  %v2088_v24 = vadd.f32 %v1834_v21, %v1726_v20 }
 0x154   : > { %v628_v25 = vpop.f32.mrf.mxu1  ;;  %v2104_v29 = vadd.f32 %v1823_v22, %v1723_v23 }
 0x155   : > { %v536_v26 = vpop.f32.mrf.mxu0  ;;  %v2090_v27 = vadd.f32 %v1726_v20, %v628_v25  ;;  %1835 = vmatprep.subr.msk.mxu0 %vm637_vm1, %v2088_v24 }
 0x156   : > { %v2094_v28 = vadd.f32 %v1723_v23, %v536_v26  ;;  %1836 = vmatpush3.xpose.msk.msra.mxu0 %vm637_vm1, %v2088_v24 }
 0x157   : > { %1837 = vmatprep.subr.msk.mxu0 %vm637_vm1, %v2090_v27 }
 0x158   : > { %1839 = vmatprep.mubr.msk.f32.mxu0 %vm637_vm1, %v2094_v28 }
 0x15a   : > { %1838 = vmatpush3.xpose.msk.msra.mxu0 %vm637_vm1, %v2090_v27 }
 0x15d   : > { %1840 = vmatmul.mubr.msk.f32.vlgmr.msra.gmra.mxu0 %vm637_vm1, %v2104_v29 }
 0x21d   : > { %v1841_v30 = vpop.f32.mrf.mxu0 }
 0x21e   : > { %v729_v31 = vsel %vm725_vm2, %v1841_v30, -inf }
 0x21f   : > { %730 = vmax.xlane.f32.xlu1 %v729_v31  ;;  %v716_v32 = vpop.f32.mrf.mxu0 }
 0x220   : > { %v726_v33 = vsel %vm725_vm2, %v716_v32, -inf }
 0x221   : > { %727 = vmax.xlane.f32.xlu0 %v726_v33 }
 0x230   : > { %748 = vrot.lane.b32.xlu1 %v2090_v27, %s1965_s24 }
 0x234   : > { %841 = vrot.lane.b32.xlu1 %v2088_v24, %s1966_s25 }
 0x237   : > { %750 = vrot.lane.b32.xlu0 %v2088_v24, %s1965_s24 }
 0x238   : > { %1041 = vrot.lane.b32.xlu1 %v2088_v24, %s1967_s26 }
 0x23b   : > { %839 = vrot.lane.b32.xlu0 %v2090_v27, %s1966_s25 }
 0x23f   : > { %835 = vrot.lane.b32.xlu0 %v2094_v28, %s1966_s25 }
 0x243   : > { %1039 = vrot.lane.b32.xlu0 %v2090_v27, %s1967_s26 }
 0x247   : > { %1037 = vrot.lane.b32.xlu0 %v2104_v29, %s1967_s26 }
 0x2a8   : > { %v731_v34 = vpop.xlane.xlu1 %730 }
 0x2a9   : > { %v733_v35 = vsub.f32 %v1841_v30, %v731_v34 }
 0x2aa   : > { %v728_v36 = vpop.xlane.xlu0 %727 }
 0x2ab   : > { %v736_v37 = vmul.f32 1.442695, %v733_v35  ;;  %v732_v38 = vsub.f32 %v716_v32, %v728_v36 }
 0x2ac   : > { %v749_v39 = vpop.permute.xlu1 %748 }
 0x2ad   : > { %1921 = vpow2.f32 %v736_v37  ;;  %v734_v40 = vmul.f32 1.442695, %v732_v38 }
 0x2ae   : > { %v751_v41 = vpop.permute.xlu0 %750 }
 0x2af   : > { %1923 = vpow2.f32 %v734_v40  ;;  %1842 = vmatprep.subr.mxu1 %v751_v41 }
 0x2b0   : > { %v842_v42 = vpop.permute.xlu1 %841  ;;  %1843 = vmatpush3.msra.mxu1 %v751_v41 }
 0x2b1   : > { %1844 = vmatprep.subr.mxu1 %v749_v39 }
 0x2b2   : > { %1845 = vmatpush3.msra.mxu1 %v749_v39  ;;  %v840_v43 = vpop.permute.xlu0 %839 }
 0x2b3   : > { %1849 = vmatprep.subr.msk.mxu1 %vm637_vm1, %v842_v42 }
 0x2b4   : > { %v1042_v44 = vpop.permute.xlu1 %1041 }
 0x2b5   : > { %1863 = vmatprep.subr.msk.mxu0 %vm637_vm1, %v1042_v44 }
 0x2b6   : > { %1864 = vmatpush3.xpose.msk.msra.mxu0 %vm637_vm1, %v1042_v44  ;;  %v836_v45 = vpop.permute.xlu0 %835 }
 0x2ba   : > { %v1922_v46 = vpop.eup %1921  ;;  %v1040_v47 = vpop.permute.xlu0 %1039 }
 0x2bb   : > { %1865 = vmatprep.subr.msk.mxu0 %vm637_vm1, %v1040_v47  ;;  %v741_v48 = vsel %vm725_vm2, %v1922_v46, 0.0 }
 0x2bc   : > { %v1924_v49 = vpop.eup %1923  ;;  %742 = vadd.xlane.f32.xlu1 %v741_v48  ;;  %1866 = vmatpush3.xpose.msk.msra.mxu0 %vm637_vm1, %v1040_v47 }
 0x2bd   : > { %v738_v50 = vsel %vm725_vm2, %v1924_v49, 0.0 }
 0x2be   : > { %v1038_v55 = vpop.permute.xlu0 %1037 }
 0x2c0   : > { %739 = vadd.xlane.f32.xlu1 %v738_v50 }
 0x2d1   : > { %837 = vrot.lane.b32.xlu1 %v2104_v29, %s1966_s25 }
 0x2d5   : > { %1035 = vrot.lane.b32.xlu1 %v2094_v28, %s1967_s26 }
 0x345   : > { %v743_v51 = vpop.xlane.xlu1 %742 }
 0x346   : > { %1925 = vrcp.f32 %v743_v51 }
 0x349   : > { %v740_v52 = vpop.xlane.xlu1 %739 }
 0x34a   : > { %1927 = vrcp.f32 %v740_v52 }
 0x34d   : > { %v838_v53 = vpop.permute.xlu1 %837 }
 0x351   : > { %v1036_v54 = vpop.permute.xlu1 %1035 }
 0x352   : > { %1867 = vmatprep.mubr.msk.f32.mxu0 %vm637_vm1, %v1036_v54 }
 0x353   : > { %1868 = vmatmul.mubr.msk.f32.vlgmr.msra.gmra.mxu0 %vm637_vm1, %v1038_v55  ;;  %v1926_v56 = vpop.eup %1925 }
 0x354   : > { %v747_v59 = vmul.f32 %v1926_v56, %v1922_v46 }
 0x357   : > { %v1928_v57 = vpop.eup %1927 }
 0x358   : > { %v746_v58 = vmul.f32 %v1928_v57, %v1924_v49 }
 0x35a   : > { %1846 = vmatprep.mubr.msk.f32.mxu1 %vm725_vm2, %v746_v58 }
 0x35b   : > { %1847 = vmatmul.mubr.msk.f32.vlgmr.msra.gmra.mxu1 %vm725_vm2, %v747_v59 }
 0x35c   : > { %1850 = vmatpush3.xpose.msk.msra.mxu1 %vm637_vm1, %v842_v42  ;;  %1853 = vmatprep.mubr.msk.f32.mxu1 %vm637_vm1, %v836_v45 }
 0x35d   : > { %1851 = vmatprep.subr.msk.mxu1 %vm637_vm1, %v840_v43 }
 0x360   : > { %1852 = vmatpush3.xpose.msk.msra.mxu1 %vm637_vm1, %v840_v43 }
 0x363   : > { %1854 = vmatmul.mubr.msk.f32.vlgmr.msra.gmra.mxu1 %vm637_vm1, %v838_v53 }
 0x413   : > { %v1869_v61 = vpop.f32.mrf.mxu0 }
 0x414   : > { %v1129_v5 = vsel %vm725_vm2, %v1869_v61, -inf }
 0x415   : > { %v1117_v1 = vpop.f32.mrf.mxu0 }
 0x416   : > { %v1126_v4 = vsel %vm725_vm2, %v1117_v1, -inf }
 0x41b   : > { %v2144_v60 = vpop.f32.mrf.mxu1 }
 0x41d   : > { %v2146_v62 = vpop.f32.mrf.mxu1 }
 0x423   : > { %v1855_v63 = vpop.f32.mrf.mxu1 }
 0x424   : > { %v929_v0 = vsel %vm725_vm2, %v1855_v63, -inf }
 0x425   : > { %930 = vmax.xlane.f32.xlu0 %v929_v0  ;;  %v917_v2 = vpop.f32.mrf.mxu1 }
 0x426   : > { %v926_v3 = vsel %vm725_vm2, %v917_v2, -inf }
 0x427   : > { %927 = vmax.xlane.f32.xlu1 %v926_v3 }
 0x429   : > { %1127 = vmax.xlane.f32.xlu0 %v1126_v4 }
 0x42b   : > { %1130 = vmax.xlane.f32.xlu1 %v1129_v5 }
 0x4ae   : > { %v931_v6 = vpop.xlane.xlu0 %930 }
 0x4af   : > { %v933_v22 = vsub.f32 %v1855_v63, %v931_v6 }
 0x4b0   : > { %v928_v7 = vpop.xlane.xlu1 %927 }
 0x4b1   : > { %v932_v20 = vsub.f32 %v917_v2, %v928_v7  ;;  %v936_v23 = vmul.f32 1.442695, %v933_v22 }
 0x4b2   : > { %v1128_v8 = vpop.xlane.xlu0 %1127 }
 0x4b3   : > { %v1132_v9 = vsub.f32 %v1117_v1, %v1128_v8  ;;  %v934_v21 = vmul.f32 1.442695, %v932_v20 }
 0x4b4   : > { %v1131_v10 = vpop.xlane.xlu1 %1130 }
 0x4b5   : > { %v1134_v11 = vmul.f32 1.442695, %v1132_v9  ;;  %v1133_v12 = vsub.f32 %v1869_v61, %v1131_v10 }
 0x4b7   : > { %1929 = vpow2.f32 %v1134_v11  ;;  %v1136_v13 = vmul.f32 1.442695, %v1133_v12 }
 0x4b9   : > { %1931 = vpow2.f32 %v1136_v13  ;;  %v1468_v13 = vld [vmem:[%s2234_s6 + $0x10] sm:$0xff] }
 0x4ba   : > { %1933 = vpow2.f32 %v934_v21 }
 0x4bb   : > { %1935 = vpow2.f32 %v936_v23 }
 0x4c4   : > { %v1930_v14 = vpop.eup %1929 }
 0x4c5   : > { %v1138_v15 = vsel %vm725_vm2, %v1930_v14, 0.0 }
 0x4c6   : > { %v1932_v16 = vpop.eup %1931  ;;  %1139 = vadd.xlane.f32.xlu0 %v1138_v15  ;;  %v1466_v15 = vld [vmem:[%s2234_s6] sm:$0xff] }
 0x4c7   : > { %v1141_v18 = vsel %vm725_vm2, %v1932_v16, 0.0  ;;  %v1934_v25 = vpop.eup %1933 }
 0x4c8   : > { %1142 = vadd.xlane.f32.xlu1 %v1141_v18  ;;  %v938_v26 = vsel %vm725_vm2, %v1934_v25, 0.0  ;;  %v1936_v30 = vpop.eup %1935 }
 0x4c9   : > { %v941_v31 = vsel %vm725_vm2, %v1936_v30, 0.0 }
 0x4d9   : > { %948 = vrot.lane.b32.xlu1 %v2090_v27, %s1968_s27 }
 0x4dc   : > { %950 = vrot.lane.b32.xlu0 %v2088_v24, %s1968_s27 }
 0x4dd   : > { %1150 = vrot.lane.b32.xlu1 %v2088_v24, %s1969_s28 }
 0x4fb   : > { %939 = vadd.xlane.f32.xlu0 %v938_v26 }
 0x501   : > { %942 = vadd.xlane.f32.xlu1 %v941_v31 }
 0x511   : > { %1148 = vrot.lane.b32.xlu0 %v2090_v27, %s1969_s28 }
 0x512   : > { %1241 = vrot.lane.b32.xlu1 %v2088_v24, %s1970_s29 }
 0x515   : > { %1239 = vrot.lane.b32.xlu0 %v2090_v27, %s1970_s29 }
 0x516   : > { %1235 = vrot.lane.b32.xlu1 %v2094_v28, %s1970_s29 }
 0x519   : > { %1237 = vrot.lane.b32.xlu0 %v2104_v29, %s1970_s29 }
 0x54f   : > { %v1140_v32 = vpop.xlane.xlu0 %1139 }
 0x551   : > { %v1143_v33 = vpop.xlane.xlu1 %1142 }
 0x553   : > { %v951_v34 = vpop.permute.xlu0 %950 }
 0x554   : > { %1856 = vmatprep.subr.mxu1 %v951_v34 }
 0x555   : > { %v949_v35 = vpop.permute.xlu1 %948  ;;  %1857 = vmatpush3.msra.mxu1 %v951_v34 }
 0x556   : > { %1858 = vmatprep.subr.mxu1 %v949_v35 }
 0x557   : > { %1859 = vmatpush3.msra.mxu1 %v949_v35 }
 0x559   : > { %v1151_v36 = vpop.permute.xlu1 %1150 }
 0x55a   : > { %1870 = vmatprep.subr.mxu1 %v1151_v36 }
 0x584   : > { %v940_v37 = vpop.xlane.xlu0 %939 }
 0x585   : > { %1937 = vrcp.f32 %v940_v37 }
 0x586   : > { %1939 = vrcp.f32 %v1140_v32 }
 0x588   : > { %v1149_v44 = vpop.permute.xlu0 %1148 }
 0x58a   : > { %v943_v38 = vpop.xlane.xlu1 %942 }
 0x58b   : > { %1941 = vrcp.f32 %v943_v38 }
 0x58c   : > { %1943 = vrcp.f32 %v1143_v33  ;;  %v1240_v48 = vpop.permute.xlu0 %1239 }
 0x58e   : > { %v1242_v41 = vpop.permute.xlu1 %1241 }
 0x590   : > { %v1238_v49 = vpop.permute.xlu0 %1237 }
 0x592   : > { %v1938_v39 = vpop.eup %1937  ;;  %v1236_v47 = vpop.permute.xlu1 %1235 }
 0x593   : > { %v946_v28 = vmul.f32 %v1938_v39, %v1934_v25  ;;  %v1940_v29 = vpop.eup %1939 }
 0x594   : > { %v1146_v45 = vmul.f32 %v1940_v29, %v1930_v14  ;;  %v1467_v14 = vld [vmem:[%s2234_s6 + $0x8] sm:$0xff] }
 0x595   : > { %1860 = vmatprep.mubr.msk.f32.mxu1 %vm725_vm2, %v946_v28 }
 0x598   : > { %v1942_v40 = vpop.eup %1941 }
 0x599   : > { %v947_v42 = vmul.f32 %v1942_v40, %v1936_v30  ;;  %v1944_v43 = vpop.eup %1943 }
 0x59a   : > { %v1147_v46 = vmul.f32 %v1944_v43, %v1932_v16 }
 0x59b   : > { %1861 = vmatmul.mubr.msk.f32.vlgmr.msra.gmra.mxu1 %vm725_vm2, %v947_v42 }
 0x59c   : > { %1871 = vmatpush3.msra.mxu1 %v1151_v36  ;;  %1874 = vmatprep.mubr.msk.f32.mxu1 %vm725_vm2, %v1146_v45 }
 0x59d   : > { %1872 = vmatprep.subr.mxu1 %v1149_v44 }
 0x59e   : > { %1873 = vmatpush3.msra.mxu1 %v1149_v44 }
 0x59f   : > { %1877 = vmatprep.subr.msk.mxu1 %vm637_vm1, %v1242_v41  ;;  %1875 = vmatmul.mubr.msk.f32.vlgmr.msra.gmra.mxu1 %vm725_vm2, %v1147_v46 }
 0x5a0   : > { %1878 = vmatpush3.xpose.msk.msra.mxu1 %vm637_vm1, %v1242_v41  ;;  %1881 = vmatprep.mubr.msk.f32.mxu1 %vm637_vm1, %v1236_v47 }
 0x5a1   : > { %1879 = vmatprep.subr.msk.mxu1 %vm637_vm1, %v1240_v48 }
 0x5a4   : > { %1880 = vmatpush3.xpose.msk.msra.mxu1 %vm637_vm1, %v1240_v48 }
 0x5a7   : > { %1882 = vmatmul.mubr.msk.f32.vlgmr.msra.gmra.mxu1 %vm637_vm1, %v1238_v49 }
 0x65b   : > { %v1862_v50 = vpop.f32.mrf.mxu1 }
 0x65d   : > { %v1026_v51 = vpop.f32.mrf.mxu1 }
 0x65f   : > { %v1876_v52 = vpop.f32.mrf.mxu1 }
 0x661   : > { %v1226_v53 = vpop.f32.mrf.mxu1 }
 0x667   : > { %v1883_v54 = vpop.f32.mrf.mxu1 }
 0x668   : > { %v1329_v55 = vsel %vm725_vm2, %v1883_v54, -inf }
 0x669   : > { %1330 = vmax.xlane.f32.xlu0 %v1329_v55  ;;  %v1317_v56 = vpop.f32.mrf.mxu1 }
 0x66a   : > { %v1326_v57 = vsel %vm725_vm2, %v1317_v56, -inf }
 0x66b   : > { %1327 = vmax.xlane.f32.xlu1 %v1326_v57 }
 0x6f2   : > { %v1331_v58 = vpop.xlane.xlu0 %1330 }
 0x6f3   : > { %v1333_v59 = vsub.f32 %v1883_v54, %v1331_v58 }
 0x6f4   : > { %v1328_v61 = vpop.xlane.xlu1 %1327 }
 0x6f5   : > { %v1336_v63 = vmul.f32 1.442695, %v1333_v59  ;;  %v1332_v0 = vsub.f32 %v1317_v56, %v1328_v61  ;;  %v1756_v59 = vld [vmem:[%s2236_s8] ss:$0 sm:$0xff] }
 0x6f7   : > { %1945 = vpow2.f32 %v1336_v63  ;;  %v1334_v1 = vmul.f32 1.442695, %v1332_v0 }
 0x6f9   : > { %1947 = vpow2.f32 %v1334_v1  ;;  %v1757_v1 = vld [vmem:[%s2237_s9] ss:$0 sm:$0xff] }
 0x704   : > { %v1946_v2 = vpop.eup %1945 }
 0x705   : > { %v1341_v3 = vsel %vm725_vm2, %v1946_v2, 0.0 }
 0x706   : > { %v1948_v4 = vpop.eup %1947  ;;  %1342 = vadd.xlane.f32.xlu1 %v1341_v3 }
 0x707   : > { %v1338_v5 = vsel %vm725_vm2, %v1948_v4, 0.0 }
 0x708   : > { %1339 = vadd.xlane.f32.xlu0 %v1338_v5 }
 0x717   : > { %1348 = vrot.lane.b32.xlu1 %v2090_v27, %s1971_s30 }
 0x71b   : > { %1437 = vrot.lane.b32.xlu1 %v1026_v51, %s1972_s11 }
 0x71e   : > { %1350 = vrot.lane.b32.xlu0 %v2088_v24, %s1971_s30  ;;  %v1469_v24 = vld [vmem:[%s2234_s6 + $0x18] sm:$0xff] }
 0x71f   : > { %1445 = vrot.lane.b32.xlu1 %v1226_v53, %s1973_s12 }
 0x722   : > { %1439 = vrot.lane.b32.xlu0 %v1862_v50, %s1972_s11 }
 0x726   : > { %1447 = vrot.lane.b32.xlu0 %v1876_v52, %s1973_s12  ;;  %s379_s12 = scalar_lea.vmem %s2238_s10, %s2050_s23 }
 0x78f   : > { %v1343_v6 = vpop.xlane.xlu1 %1342 }
 0x790   : > { %1949 = vrcp.f32 %v1343_v6 }
 0x791   : > { %v1340_v7 = vpop.xlane.xlu0 %1339 }
 0x792   : > { %1951 = vrcp.f32 %v1340_v7 }
 0x793   : > { %v1349_v9 = vpop.permute.xlu1 %1348 }
 0x795   : > { %v1351_v8 = vpop.permute.xlu0 %1350 }
 0x796   : > { %1884 = vmatprep.subr.mxu0 %v1351_v8 }
 0x797   : > { %1885 = vmatpush3.msra.mxu0 %v1351_v8  ;;  %v1438_v21 = vpop.permute.xlu1 %1437 }
 0x798   : > { %1886 = vmatprep.subr.mxu0 %v1349_v9  ;;  %v1459_v25 = vsel %vm637_vm1, %v2146_v62, %v1438_v21  ;;  %v1753_v62 = vld [vmem:[%s2235_s7] ss:$0 sm:$0xff] }
 0x799   : > { %1887 = vmatpush3.msra.mxu0 %v1349_v9  ;;  %v1440_v20 = vpop.permute.xlu0 %1439 }
 0x79a   : > { %1891 = vmatprep.subr.mxu0 %v1469_v24  ;;  %v1460_v30 = vsel %vm637_vm1, %v2144_v60, %v1440_v20 }
 0x79b   : > { %v1446_v23 = vpop.permute.xlu1 %1445 }
 0x79c   : > { %v1461_v31 = vsel %vm725_vm2, %v1459_v25, %v1446_v23 }
 0x79d   : > { %v1950_v10 = vpop.eup %1949  ;;  %v1448_v22 = vpop.permute.xlu0 %1447 }
 0x79e   : > { %v1347_v12 = vmul.f32 %v1950_v10, %v1946_v2  ;;  %v1462_v33 = vsel %vm725_vm2, %v1460_v30, %v1448_v22 }
 0x79f   : > { %v1952_v27 = vpop.eup %1951 }
 0x7a0   : > { %v1346_v11 = vmul.f32 %v1952_v27, %v1948_v4 }
 0x7a2   : > { %1888 = vmatprep.mubr.msk.f32.mxu0 %vm725_vm2, %v1346_v11 }
 0x7a3   : > { %1889 = vmatmul.mubr.msk.f32.vlgmr.msra.gmra.mxu0 %vm725_vm2, %v1347_v12 }
 0x7a4   : > { %1892 = vmatpush3.msra.mxu0 %v1469_v24 }
 0x7a5   : > { %1893 = vmatprep.subr.mxu0 %v1468_v13 }
 0x7a6   : > { %1894 = vmatpush3.msra.mxu0 %v1468_v13 }
 0x7a7   : > { %1895 = vmatprep.subr.mxu0 %v1467_v14 }
 0x7a8   : > { %1896 = vmatpush3.msra.mxu0 %v1467_v14 }
 0x7a9   : > { %1897 = vmatprep.subr.mxu0 %v1466_v15 }
 0x7aa   : > { %1898 = vmatpush3.msra.mxu0 %v1466_v15 }
 0x863   : > { %v1890_v16 = vpop.f32.mrf.mxu0 }
 0x864   : > { %1455 = vrot.lane.b32.xlu0 %v1890_v16, %s1974_s22 }
 0x865   : > { %v1426_v18 = vpop.f32.mrf.mxu0 }
 0x866   : > { %1453 = vrot.lane.b32.xlu1 %v1426_v18, %s1974_s22 }
 0x8d6   : > { %v1456_v26 = vpop.permute.xlu0 %1455 }
 0x8d7   : > { %v1465_v35 = vsel %vm1463_vm3, %v1462_v33, %v1456_v26 }
 0x8d8   : > { %v1454_v32 = vpop.permute.xlu1 %1453 }
 0x8d9   : > { %v1464_v34 = vsel %vm1463_vm3, %v1461_v31, %v1454_v32 }
 0x8da   : > { %1899 = vmatprep.mubr.msk.f32.mxu0 %vm463_vm0, %v1464_v34 }
 0x8db   : > { %1900 = vmatmul.mubr.msk.f32.vlgmr.msra.gmra.mxu0 %vm463_vm0, %v1465_v35 }
 0x99b   : > { %v1901_v36 = vpop.f32.mrf.mxu0 }
 0x99c   : > { %v1555_v37 = vadd.f32 %v1901_v36, %v1753_v62 }
 0x99d   : > { %v1549_v38 = vpop.f32.mrf.mxu0 }
 0x99e   : > { %v1559_v60 = vadd.f32 %v1555_v37, %v2077_v19  ;;  %v1550_v39 = vadd.f32 %v1753_v62, %v1549_v38 }
 0x9a0   : > { %v1558_v28 = vadd.f32 %v1550_v39, %v2072_v17  ;;  %v1563_v29 = vsel %vm463_vm0, %v1559_v60, 0.0  ;;  %v1570_v42 = vmul.f32 %v1559_v60, %v1559_v60 }
 0x9a1   : > { %1564 = vadd.xlane.f32.xlu0 %v1563_v29 }
 0x9a2   : > { %v1560_v40 = vsel %vm463_vm0, %v1558_v28, 0.0  ;;  %v1569_v41 = vmul.f32 %v1558_v28, %v1558_v28  ;;  %v1574_v44 = vsel %vm463_vm0, %v1570_v42, 0.0 }
 0x9a3   : > { %1561 = vadd.xlane.f32.xlu1 %v1560_v40 }
 0x9a4   : > { %v1571_v43 = vsel %vm463_vm0, %v1569_v41, 0.0 }
 0x9a5   : > { %1572 = vadd.xlane.f32.xlu0 %v1571_v43 }
 0x9a7   : > { %1575 = vadd.xlane.f32.xlu1 %v1574_v44 }
 0xa2a   : > { %v1565_v45 = vpop.xlane.xlu0 %1564 }
 0xa2b   : > { %v1568_v19 = vmul.f32 0.03125, %v1565_v45 }
 0xa2c   : > { %v1562_v46 = vpop.xlane.xlu1 %1561 }
 0xa2d   : > { %v1567_v47 = vmul.f32 0.03125, %v1562_v46  ;;  %v1580_v51 = vmul.f32 %v1568_v19, %v1568_v19  ;;  %v1584_v61 = vsub.f32 %v1559_v60, %v1568_v19 }
 0xa2e   : > { %v1573_v48 = vpop.xlane.xlu0 %1572 }
 0xa2f   : > { %v1579_v17 = vmul.f32 %v1567_v47, %v1567_v47  ;;  %v1577_v49 = vmul.f32 0.03125, %v1573_v48  ;;  %v1583_v57 = vsub.f32 %v1558_v28, %v1567_v47 }
 0xa30   : > { %v1576_v50 = vpop.xlane.xlu1 %1575 }
 0xa31   : > { %v1581_v52 = vsub.f32 %v1577_v49, %v1579_v17  ;;  %v1578_v53 = vmul.f32 0.03125, %v1576_v50 }
 0xa33   : > { %v1585_v54 = vadd.f32 1e-05, %v1581_v52  ;;  %v1582_v55 = vsub.f32 %v1578_v53, %v1580_v51 }
 0xa35   : > { %1953 = vrsqrt.f32 %v1585_v54  ;;  %v1586_v56 = vadd.f32 1e-05, %v1582_v55 }
 0xa37   : > { %1955 = vrsqrt.f32 %v1586_v56 }
 0xa42   : > { %v1954_v58 = vpop.eup %1953 }
 0xa43   : > { %v1589_v63 = vmul.f32 %v1954_v58, %v1583_v57 }
 0xa44   : > { %v1956_v0 = vpop.eup %1955 }
 0xa45   : > { %v1598_v2 = vmul.f32 %v1756_v59, %v1589_v63  ;;  %v1590_v3 = vmul.f32 %v1956_v0, %v1584_v61 }
 0xa47   : > { %v1607_v4 = vadd.f32 %v1757_v1, %v1598_v2  ;;  %v1599_v5 = vmul.f32 %v1756_v59, %v1590_v3 }
 0xa49   : > { %1609 = vxpose.xlu0.b32.start [1/2] (short) (narrow) %v1607_v4, 32  ;;  %v1608_v6 = vadd.f32 %v1757_v1, %v1599_v5 }
 0xa4d   : > { %1610 = vxpose.xlu0.b32.end [2/2] (short) (narrow) %v1608_v6, 32 }
 0xac5   : > { %v1625_v7 = vpop.trf.xlu0 }
 0xac6   : > { %1641 = vst.msk [vmem:[%s379_s12] sm:$0xff] %vm725_vm2, %v1625_v7 }
 0xac9   : > { %v1626_v8 = vpop.trf.xlu0 }
 0xaca   : > { %1642 = vst.msk [vmem:[%s379_s12 + $0x8] sm:$0xff] %vm725_vm2, %v1626_v8 }
 0xacd   : > { %v1627_v9 = vpop.trf.xlu0 }
 0xace   : > { %1643 = vst.msk [vmem:[%s379_s12 + $0x10] sm:$0xff] %vm725_vm2, %v1627_v9 }
 0xad1   : > { %v1628_v10 = vpop.trf.xlu0 }
 0xad2   : > { %1644 = vst.msk [vmem:[%s379_s12 + $0x18] sm:$0xff] %vm725_vm2, %v1628_v10 }
 0xad3 PF: > { %s20_s13 = sadd.s32 1, %s1963_s13  }
 0xad4   : > { %p17_p4 = scmp.ge.s32.totalorder %s20_s13, 4  }
 0xad6   :  { %19 = sbr.rel (!%p17_p4) target bundleno = 1 (0x1), region = 93 }

</bundles_post_ra>
